<compile_context>
chip_gen: v7x
topology: tpu7x:2x2x1
jax: 0.10.0
libtpu: 0.0.40
codegen_flags: <defaults>
</compile_context>

<pallas_src>
import functools

import jax
import jax.numpy as jnp
from jax import lax
from jax.experimental import pallas as pl
from jax.experimental.pallas import tpu as pltpu


# ----------------------------------------------------------------------------
# Pallas kernel: 3x3 conv (stride 1, pad 1) for the whole batch in one grid
# step, expressed as KH banded MXU matmuls on lane-dense 2-D slabs.
# ----------------------------------------------------------------------------
def firstconv_kernel(xp_ref, wb_ref, o_ref, *, N, H, KH):
    # xp_ref: (N, H+2, K_pad)   bf16 zero-padded input, channels folded into lanes
    # wb_ref: (KH, K_pad, W*Cout) bf16 banded weight matrices (one per kernel row)
    # o_ref : (N, H, W*Cout)    f32 lane-dense output slab (lanes ordered (c, j, w'))
    for n in range(N):                      # tiny unrolled batch loop (single grid step)
        acc = jnp.dot(xp_ref[n, 0:H, :], wb_ref[0],
                      preferred_element_type=jnp.float32)
        for dy in range(1, KH):             # fully unrolled, KH=3
            acc = acc + jnp.dot(xp_ref[n, dy:dy + H, :], wb_ref[dy],
                                preferred_element_type=jnp.float32)
        o_ref[n] = acc.astype(o_ref.dtype)


# ----------------------------------------------------------------------------
# Parameter preprocessing (input-independent; build once, reuse every forward)
# ----------------------------------------------------------------------------
def scaled_std_weight(w_oihw, gain, gamma=1.0, eps=1e-5, use_layernorm=True):
    """ScaledStdConv2d get_weight(): per-out-channel layer-norm of the weight,
    scaled by gamma * fan_in**-0.5, then multiplied by the learnable gain."""
    O = w_oihw.shape[0]
    fan_in = w_oihw[0].size
    scale = gamma * fan_in ** -0.5
    wf = w_oihw.reshape(O, -1).astype(jnp.float32)
    mean = wf.mean(axis=1, keepdims=True)
    var = wf.var(axis=1, keepdims=True)                 # biased variance
    e = eps ** 2 if use_layernorm else eps
    w_std = (wf - mean) / jnp.sqrt(var + e) * (scale * gain.reshape(O, 1))
    return w_std.reshape(w_oihw.shape)


def pixelunshuffle_col_perm(W, Cout):
    """Column permutation so output lane L = c*W + j*(W//2) + w' holds the conv
    element at spatial column w = 2*w'+j, channel c (old column w*Cout + c)."""
    c = jnp.arange(Cout)
    j = jnp.arange(2)
    wp = jnp.arange(W // 2)
    old = (2 * wp[None, None, :] + j[None, :, None]) * Cout + c[:, None, None]
    return old.reshape(-1)                              # ordered (c, j, w')


def banded_weights(w_hwio, W, k_pad, col_perm):
    """Per-kernel-row banded matrices Wb[dy] of shape (k_pad, W*Cout) such that
       out_row(h) = sum_dy padded_row(h+dy) @ Wb[dy]
    reproduces a 3x3 conv (stride 1, padding 1) on channel-packed rows, with the
    output columns permuted by col_perm and the K axis zero-padded to k_pad."""
    KH, KW, Cin, Cout = w_hwio.shape
    Wp = W + KW - 1                                     # padded row width
    p = jnp.arange(Wp)
    wi = jnp.arange(W)
    bands = []
    for dy in range(KH):
        acc = jnp.zeros((Wp, Cin, W, Cout), jnp.float32)
        for dx in range(KW):
            sel = (p[:, None] == (wi[None, :] + dx)).astype(jnp.float32)  # (Wp, W)
            acc = acc + jnp.einsum('pw,io->piwo', sel, w_hwio[dy, dx])
        band = acc.reshape(Wp * Cin, W * Cout)
        band = band[:, col_perm]                        # fold PixelUnshuffle lane order
        bands.append(band)
    wb = jnp.stack(bands, axis=0)                       # (KH, Wp*Cin, W*Cout)
    wb = jnp.pad(wb, ((0, 0), (0, k_pad - Wp * Cin), (0, 0)))   # 128-aligned K
    return wb


def make_firstconv_params(w_oihw, gain, W, *, gamma=1.0, eps=1e-5, lanes=128):
    """Everything input-independent: weight standardisation + banded matrices."""
    Cout, Cin, KH, KW = w_oihw.shape
    w_std = scaled_std_weight(w_oihw, gain, gamma=gamma, eps=eps, use_layernorm=True)
    w_hwio = jnp.transpose(w_std, (2, 3, 1, 0))         # (KH, KW, Cin, Cout)
    k_raw = (W + KW - 1) * Cin
    k_pad = -(-k_raw // lanes) * lanes                  # round up to lane width
    perm = pixelunshuffle_col_perm(W, Cout)
    wband = banded_weights(w_hwio, W, k_pad, perm)      # (KH, k_pad, W*Cout) f32
    return wband.astype(jnp.bfloat16)


# ----------------------------------------------------------------------------
# JAX wrapper: layout glue + pallas_call + PixelUnshuffle(2) epilogue
# ----------------------------------------------------------------------------
def firstconv_forward_pallas(x_nchw, wband):
    N, Cin, H, W = x_nchw.shape
    KH, K_pad, L = wband.shape
    Cout = L // W
    assert L == W * Cout
    assert H % 2 == 0 and W % 2 == 0, "PixelUnshuffle(2) requires even H and W"
    k_raw = (W + KH - 1) * Cin                          # KW == KH == 3
    assert k_raw <= K_pad

    # NCHW -> NHWC, zero-pad spatially by 1, fold channels into the lane axis,
    # zero-pad K to the 128-aligned K_pad, cast to bf16.
    x = jnp.transpose(x_nchw, (0, 2, 3, 1))
    xp = jnp.pad(x, ((0, 0), (1, 1), (1, 1), (0, 0)))
    xp2d = xp.reshape(N, H + 2, k_raw)
    xp2d = jnp.pad(xp2d, ((0, 0), (0, 0), (0, K_pad - k_raw))).astype(jnp.bfloat16)

    kern = functools.partial(firstconv_kernel, N=N, H=H, KH=KH)

    y = pl.pallas_call(
        kern,
        out_shape=jax.ShapeDtypeStruct((N, H, L), jnp.float32),
        grid_spec=pltpu.PrefetchScalarGridSpec(
            num_scalar_prefetch=0,
            grid=(1,),                                  # single step: batch merged
            in_specs=[
                pl.BlockSpec((N, H + 2, K_pad), lambda i: (0, 0, 0)),
                pl.BlockSpec((KH, K_pad, L), lambda i: (0, 0, 0)),
            ],
            out_specs=pl.BlockSpec((N, H, L), lambda i: (0, 0, 0)),
        ),
        compiler_params=pltpu.CompilerParams(
            dimension_semantics=("arbitrary",)),
    )(xp2d, wband)

    # Lanes are ordered (c, j, w') thanks to the weight column permutation, so
    # the PixelUnshuffle(2) epilogue is: free reshape + ONE transpose + free reshape.
    y = y.reshape(N, H // 2, 2, Cout, 2, W // 2)        # n, h', i, c, j, w'
    out = jnp.transpose(y, (0, 3, 2, 4, 1, 5))          # n, c, i, j, h', w'
    return out.reshape(N, Cout * 4, H // 2, W // 2)


# ----------------------------------------------------------------------------
# Pure-JAX reference (mirrors the PyTorch forward exactly, f32 end to end)
# ----------------------------------------------------------------------------
def firstconv_forward_ref(x_nchw, w_oihw, gain):
    N, Cin, H, W = x_nchw.shape
    Cout = w_oihw.shape[0]
    w_std = scaled_std_weight(w_oihw, gain)
    out = lax.conv_general_dilated(
        x_nchw.astype(jnp.float32), w_std, window_strides=(1, 1),
        padding=((1, 1), (1, 1)),
        dimension_numbers=("NCHW", "OIHW", "NCHW"))
    # nn.PixelUnshuffle(2): out[n, c*4 + 2i + j, h, w] = in[n, c, 2h+i, 2w+j]
    out = out.reshape(N, Cout, H // 2, 2, W // 2, 2)
    out = jnp.transpose(out, (0, 1, 3, 5, 2, 4)).reshape(N, Cout * 4, H // 2, W // 2)
    return out


if __name__ == "__main__":
    # small shapes consistent with the module: x (N, inp, H, W); conv out = oup//4
    N, inp, H, W = 2, 4, 16, 16
    oup = 32
    Cout = oup // 4          # conv1 output channels (8); PixelUnshuffle(2) restores oup

    key = jax.random.PRNGKey(0)
    kx, kw, kg = jax.random.split(key, 3)
    x = jax.random.normal(kx, (N, inp, H, W), jnp.float32)
    w = jax.random.normal(kw, (Cout, inp, 3, 3), jnp.float32) * 0.1
    gain = 1.0 + 0.1 * jax.random.normal(kg, (Cout,), jnp.float32)

    # Parameter preprocessing: once, outside the per-forward path.
    wband = make_firstconv_params(w, gain, W)

    fwd = jax.jit(firstconv_forward_pallas)
    out = jax.block_until_ready(fwd(x, wband))
    assert out.shape == (N, oup, H // 2, W // 2), out.shape

    ref = firstconv_forward_ref(x, w, gain)
    max_err = float(jnp.max(jnp.abs(out - ref)))
    # bf16 MXU operands (f32 accumulation) -> allow bf16-level error vs f32 ref.
    assert max_err < 5e-2, f"mismatch vs reference: {max_err}"

    print("KERNEL_OK")
</pallas_src>

<mosaic_0001>
module attributes {stable_mosaic.version = 11 : i64} {
  func.func @firstconv_kernel(%arg0: i32, %arg1: memref<2x18x128xbf16, #tpu.memory_space<vmem>>, %arg2: memref<3x128x128xbf16, #tpu.memory_space<vmem>>, %arg3: memref<2x16x128xf32, #tpu.memory_space<vmem>>) attributes {dimension_semantics = [#tpu.dimension_semantics<arbitrary>], iteration_bounds = array<i64: 1>, scalar_prefetch = 0 : i64, scratch_operands = 0 : i64, tpu.core_type = #tpu.core_type<tc>, window_params = [{pipeline_mode = #tpu.pipeline_mode<synchronous>, transform_indices = @transform_0, window_bounds = array<i64: 2, 18, 128>}, {pipeline_mode = #tpu.pipeline_mode<synchronous>, transform_indices = @transform_1, window_bounds = array<i64: 3, 128, 128>}, {pipeline_mode = #tpu.pipeline_mode<synchronous>, transform_indices = @transform_2, window_bounds = array<i64: 2, 16, 128>}]} {
    %c0 = arith.constant 0 : index
    %c0_0 = arith.constant 0 : index
    %c0_1 = arith.constant 0 : index
    %0 = vector.load %arg1[%c0, %c0_0, %c0_1] : memref<2x18x128xbf16, #tpu.memory_space<vmem>>, vector<1x16x128xbf16>
    %1 = vector.shape_cast %0 : vector<1x16x128xbf16> to vector<16x128xbf16>
    %c0_2 = arith.constant 0 : index
    %c0_3 = arith.constant 0 : index
    %c0_4 = arith.constant 0 : index
    %2 = vector.load %arg2[%c0_2, %c0_3, %c0_4] : memref<3x128x128xbf16, #tpu.memory_space<vmem>>, vector<1x128x128xbf16>
    %3 = vector.shape_cast %2 : vector<1x128x128xbf16> to vector<128x128xbf16>
    %cst = arith.constant dense<0.000000e+00> : vector<16x128xf32>
    %4 = tpu.matmul %1, %3, %cst {dimension_numbers = #tpu.dot_dimension_numbers<[1], [0], [0], [1], [0, 0, 1, 1], [], []>} : vector<16x128xbf16>, vector<128x128xbf16>, vector<16x128xf32> -> vector<16x128xf32>
    %c0_5 = arith.constant 0 : index
    %c1 = arith.constant 1 : index
    %c0_6 = arith.constant 0 : index
    %5 = vector.load %arg1[%c0_5, %c1, %c0_6] : memref<2x18x128xbf16, #tpu.memory_space<vmem>>, vector<1x16x128xbf16>
    %6 = vector.shape_cast %5 : vector<1x16x128xbf16> to vector<16x128xbf16>
    %c1_7 = arith.constant 1 : index
    %c0_8 = arith.constant 0 : index
    %c0_9 = arith.constant 0 : index
    %7 = vector.load %arg2[%c1_7, %c0_8, %c0_9] : memref<3x128x128xbf16, #tpu.memory_space<vmem>>, vector<1x128x128xbf16>
    %8 = vector.shape_cast %7 : vector<1x128x128xbf16> to vector<128x128xbf16>
    %cst_10 = arith.constant dense<0.000000e+00> : vector<16x128xf32>
    %9 = tpu.matmul %6, %8, %cst_10 {dimension_numbers = #tpu.dot_dimension_numbers<[1], [0], [0], [1], [0, 0, 1, 1], [], []>} : vector<16x128xbf16>, vector<128x128xbf16>, vector<16x128xf32> -> vector<16x128xf32>
    %10 = arith.addf %4, %9 : vector<16x128xf32>
    %c0_11 = arith.constant 0 : index
    %c2 = arith.constant 2 : index
    %c0_12 = arith.constant 0 : index
    %11 = vector.load %arg1[%c0_11, %c2, %c0_12] : memref<2x18x128xbf16, #tpu.memory_space<vmem>>, vector<1x16x128xbf16>
    %12 = vector.shape_cast %11 : vector<1x16x128xbf16> to vector<16x128xbf16>
    %c2_13 = arith.constant 2 : index
    %c0_14 = arith.constant 0 : index
    %c0_15 = arith.constant 0 : index
    %13 = vector.load %arg2[%c2_13, %c0_14, %c0_15] : memref<3x128x128xbf16, #tpu.memory_space<vmem>>, vector<1x128x128xbf16>
    %14 = vector.shape_cast %13 : vector<1x128x128xbf16> to vector<128x128xbf16>
    %cst_16 = arith.constant dense<0.000000e+00> : vector<16x128xf32>
    %15 = tpu.matmul %12, %14, %cst_16 {dimension_numbers = #tpu.dot_dimension_numbers<[1], [0], [0], [1], [0, 0, 1, 1], [], []>} : vector<16x128xbf16>, vector<128x128xbf16>, vector<16x128xf32> -> vector<16x128xf32>
    %16 = arith.addf %10, %15 : vector<16x128xf32>
    %c0_17 = arith.constant 0 : index
    %c0_18 = arith.constant 0 : index
    %c0_19 = arith.constant 0 : index
    %17 = vector.load %arg3[%c0_17, %c0_18, %c0_19] : memref<2x16x128xf32, #tpu.memory_space<vmem>>, vector<1x16x128xf32>
    %18 = vector.shape_cast %17 : vector<1x16x128xf32> to vector<16x128xf32>
    %19 = vector.shape_cast %16 : vector<16x128xf32> to vector<1x16x128xf32>
    tpu.vector_store %arg3[%c0_17, %c0_18, %c0_19], %19 {strides = array<i32>} : memref<2x16x128xf32, #tpu.memory_space<vmem>>, vector<1x16x128xf32>,
    %c1_20 = arith.constant 1 : index
    %c0_21 = arith.constant 0 : index
    %c0_22 = arith.constant 0 : index
    %20 = vector.load %arg1[%c1_20, %c0_21, %c0_22] : memref<2x18x128xbf16, #tpu.memory_space<vmem>>, vector<1x16x128xbf16>
    %21 = vector.shape_cast %20 : vector<1x16x128xbf16> to vector<16x128xbf16>
    %c0_23 = arith.constant 0 : index
    %c0_24 = arith.constant 0 : index
    %c0_25 = arith.constant 0 : index
    %22 = vector.load %arg2[%c0_23, %c0_24, %c0_25] : memref<3x128x128xbf16, #tpu.memory_space<vmem>>, vector<1x128x128xbf16>
    %23 = vector.shape_cast %22 : vector<1x128x128xbf16> to vector<128x128xbf16>
    %cst_26 = arith.constant dense<0.000000e+00> : vector<16x128xf32>
    %24 = tpu.matmul %21, %23, %cst_26 {dimension_numbers = #tpu.dot_dimension_numbers<[1], [0], [0], [1], [0, 0, 1, 1], [], []>} : vector<16x128xbf16>, vector<128x128xbf16>, vector<16x128xf32> -> vector<16x128xf32>
    %c1_27 = arith.constant 1 : index
    %c1_28 = arith.constant 1 : index
    %c0_29 = arith.constant 0 : index
    %25 = vector.load %arg1[%c1_27, %c1_28, %c0_29] : memref<2x18x128xbf16, #tpu.memory_space<vmem>>, vector<1x16x128xbf16>
    %26 = vector.shape_cast %25 : vector<1x16x128xbf16> to vector<16x128xbf16>
    %c1_30 = arith.constant 1 : index
    %c0_31 = arith.constant 0 : index
    %c0_32 = arith.constant 0 : index
    %27 = vector.load %arg2[%c1_30, %c0_31, %c0_32] : memref<3x128x128xbf16, #tpu.memory_space<vmem>>, vector<1x128x128xbf16>
    %28 = vector.shape_cast %27 : vector<1x128x128xbf16> to vector<128x128xbf16>
    %cst_33 = arith.constant dense<0.000000e+00> : vector<16x128xf32>
    %29 = tpu.matmul %26, %28, %cst_33 {dimension_numbers = #tpu.dot_dimension_numbers<[1], [0], [0], [1], [0, 0, 1, 1], [], []>} : vector<16x128xbf16>, vector<128x128xbf16>, vector<16x128xf32> -> vector<16x128xf32>
    %30 = arith.addf %24, %29 : vector<16x128xf32>
    %c1_34 = arith.constant 1 : index
    %c2_35 = arith.constant 2 : index
    %c0_36 = arith.constant 0 : index
    %31 = vector.load %arg1[%c1_34, %c2_35, %c0_36] : memref<2x18x128xbf16, #tpu.memory_space<vmem>>, vector<1x16x128xbf16>
    %32 = vector.shape_cast %31 : vector<1x16x128xbf16> to vector<16x128xbf16>
    %c2_37 = arith.constant 2 : index
    %c0_38 = arith.constant 0 : index
    %c0_39 = arith.constant 0 : index
    %33 = vector.load %arg2[%c2_37, %c0_38, %c0_39] : memref<3x128x128xbf16, #tpu.memory_space<vmem>>, vector<1x128x128xbf16>
    %34 = vector.shape_cast %33 : vector<1x128x128xbf16> to vector<128x128xbf16>
    %cst_40 = arith.constant dense<0.000000e+00> : vector<16x128xf32>
    %35 = tpu.matmul %32, %34, %cst_40 {dimension_numbers = #tpu.dot_dimension_numbers<[1], [0], [0], [1], [0, 0, 1, 1], [], []>} : vector<16x128xbf16>, vector<128x128xbf16>, vector<16x128xf32> -> vector<16x128xf32>
    %36 = arith.addf %30, %35 : vector<16x128xf32>
    %c1_41 = arith.constant 1 : index
    %c0_42 = arith.constant 0 : index
    %c0_43 = arith.constant 0 : index
    %37 = vector.load %arg3[%c1_41, %c0_42, %c0_43] : memref<2x16x128xf32, #tpu.memory_space<vmem>>, vector<1x16x128xf32>
    %38 = vector.shape_cast %37 : vector<1x16x128xf32> to vector<16x128xf32>
    %39 = vector.shape_cast %36 : vector<16x128xf32> to vector<1x16x128xf32>
    tpu.vector_store %arg3[%c1_41, %c0_42, %c0_43], %39 {strides = array<i32>} : memref<2x16x128xf32, #tpu.memory_space<vmem>>, vector<1x16x128xf32>,
    return
  }
  func.func @transform_0(%arg0: i32) -> (i32, i32, i32) {
    %c0_i32 = arith.constant 0 : i32
    %c0_i32_0 = arith.constant 0 : i32
    %c0_i32_1 = arith.constant 0 : i32
    %c0_i32_2 = arith.constant 0 : i32
    return %c0_i32, %c0_i32_0, %c0_i32_1 : i32, i32, i32
  }
  func.func @transform_1(%arg0: i32) -> (i32, i32, i32) {
    %c0_i32 = arith.constant 0 : i32
    %c0_i32_0 = arith.constant 0 : i32
    %c0_i32_1 = arith.constant 0 : i32
    %c0_i32_2 = arith.constant 0 : i32
    return %c0_i32, %c0_i32_0, %c0_i32_1 : i32, i32, i32
  }
  func.func @transform_2(%arg0: i32) -> (i32, i32, i32) {
    %c0_i32 = arith.constant 0 : i32
    %c0_i32_0 = arith.constant 0 : i32
    %c0_i32_1 = arith.constant 0 : i32
    %c0_i32_2 = arith.constant 0 : i32
    return %c0_i32, %c0_i32_0, %c0_i32_1 : i32, i32, i32
  }
}

</mosaic_0001>

<bundles_post_ra>
// kernel: firstconv_forward_pallas.1
= control target key start
LH: loop header
LB: loop body
LE: loop exit
PB: predicated region body
PF: predicated region fallthrough
CT: control target
= control target key end

     0   :  { %v1096_v0 = vmov 0.0   ;;  %vm1097_vm0 = vmmov 0   ;;  %vm56_vm1 = vsmask.f32 7424  ;;  %vm270_vm2 = vcmask 1046528   ;;  %s1381_s1 = inlined_call_operand.vmem [shape: bf16[3,128,128], index: 1, kind: input, shape index: {}]   ;;  %s1382_s0 = inlined_call_operand.vmem [shape: bf16[2,18,128], index: 0, kind: input, shape index: {}]   ;;  %s1383_s2 = inlined_call_operand.vmem [shape: f32[2,16,128], index: 2, kind: output, shape index: {}]  }
   0x1   :  { %904 = vmatprep.subr.bf16.mxu0 %v1096_v0  ;;  %964 = vmatprep.subr.bf16.mxu1 %v1096_v0  ;;  %v1042_v1 = vld [vmem:[%s1381_s1 + $0x40] sm:$0xff]   ;;  %v1044_v3 = vld [vmem:[%s1381_s1 + $0x48] sm:$0xff]   ;;  %v1046_v5 = vld [vmem:[%s1381_s1 + $0x50] sm:$0xff]  }
   0x2   :  { %v1043_v2 = vld [vmem:[%s1381_s1 + $0x40] sm:$0xff]   ;;  %920 = vmatprep.mubr.msk.bf16.mxu0 %vm1097_vm0, %v1096_v0  ;;  %980 = vmatprep.mubr.msk.bf16.mxu1 %vm1097_vm0, %v1096_v0  ;;  %v1045_v4 = vld [vmem:[%s1381_s1 + $0x48] sm:$0xff]   ;;  %v1047_v6 = vld [vmem:[%s1381_s1 + $0x50] sm:$0xff]  }
   0x3   :  { %905 = vmatpush3.bf16.msra.mxu0 %v1042_v1  ;;  %965 = vmatpush3.bf16.msra.mxu1 %v1043_v2  ;;  %v1048_v7 = vld [vmem:[%s1381_s1 + $0x58] sm:$0xff]   ;;  %v1050_v9 = vld [vmem:[%s1381_s1 + $0x60] sm:$0xff]   ;;  %v1052_v13 = vld [vmem:[%s1381_s1 + $0x68] sm:$0xff]  }
   0x4   :  { %906 = vmatprep.subr.bf16.mxu0 %v1096_v0  ;;  %966 = vmatprep.subr.bf16.mxu1 %v1096_v0  ;;  %v1049_v8 = vld [vmem:[%s1381_s1 + $0x58] sm:$0xff]   ;;  %v1051_v10 = vld [vmem:[%s1381_s1 + $0x60] sm:$0xff]   ;;  %v1174_v15 = vld [vmem:[%s1382_s0 + $0x8] ss:$0 sps:$4 sm:$0x11]  }
   0x5   :  { %v12_v11 = vld [vmem:[%s1382_s0] sm:$0xf]  ;;  %v1163_v12 = vld [vmem:[%s1382_s0 + $0x4] sm:$0xf]  ;;  %v785_v16 = vld [vmem:[%s1382_s0 + $0xc] sm:$0xf] }
   0x6   :  { %v1169_v14 = vcombine.low %v12_v11, %v1163_v12  ;;  %v1182_v17 = vld [vmem:[%s1382_s0 + $0x10] sm:$0xf]  ;;  %v1053_v18 = vld [vmem:[%s1381_s1 + $0x68] sm:$0xff]   ;;  %v1199_v22 = vld [vmem:[%s1382_s0 + $0x14] ss:$0 sps:$4 sm:$0x11]  }
   0x7   :  { %907 = vmatpush3.bf16.msra.mxu0 %v1044_v3  ;;  %967 = vmatpush3.bf16.msra.mxu1 %v1045_v4  ;;  %v1190_v20 = vcombine.low %v785_v16, %v1182_v17  ;;  %v1054_v21 = vld [vmem:[%s1381_s1 + $0x70] sm:$0xff]   ;;  %v65_v25 = vshll.u32 %v1174_v15, 16  ;;  %v420_v30 = vshll.u32 %v1199_v22, 16  ;;  %v1056_v31 = vld [vmem:[%s1381_s1 + $0x78] sm:$0xff]   ;;  %v1060_v38 = vld [vmem:[%s1381_s1] sm:$0xff]   ;;  %v272_v53 = vrot.slane %v1174_v15, 1 }
   0x8   :  { %908 = vmatprep.subr.bf16.mxu0 %v1096_v0  ;;  %968 = vmatprep.subr.bf16.mxu1 %v1096_v0  ;;  %v60_v19 = vshll.u32 %v1169_v14, 16  ;;  %v1055_v23 = vld [vmem:[%s1381_s1 + $0x70] sm:$0xff]   ;;  %v58_v24 = vshrl.u32 %v1169_v14, 16  ;;  %v1057_v34 = vld [vmem:[%s1381_s1 + $0x78] sm:$0xff]   ;;  %v1063_v40 = vld [vmem:[%s1381_s1] sm:$0xff]   ;;  %v625_v56 = vrot.slane %v1199_v22, 1 }
   0x9   :  { %v415_v26 = vshll.u32 %v1190_v20, 16  ;;  %v413_v28 = vshrl.u32 %v1190_v20, 16  ;;  %v67_v33 = vrot.slane %v65_v25, 1  ;;  %v422_v36 = vrot.slane %v420_v30, 1  ;;  %v1064_v41 = vld [vmem:[%s1381_s1 + $0x8] sm:$0xff]   ;;  %v1066_v43 = vld [vmem:[%s1381_s1 + $0x10] sm:$0xff]  }
   0xa   :  { %v62_v27 = vrot.slane %v60_v19, 1  ;;  %v1065_v42 = vld [vmem:[%s1381_s1 + $0x8] sm:$0xff]   ;;  %v1067_v44 = vld [vmem:[%s1381_s1 + $0x10] sm:$0xff]   ;;  %v1068_v45 = vld [vmem:[%s1381_s1 + $0x18] sm:$0xff]  }
   0xb   :  { %909 = vmatpush3.bf16.msra.mxu0 %v1046_v5  ;;  %969 = vmatpush3.bf16.msra.mxu1 %v1047_v6  ;;  %v417_v29 = vrot.slane %v415_v26, 1  ;;  %v1069_v46 = vld [vmem:[%s1381_s1 + $0x18] sm:$0xff]   ;;  %v1070_v47 = vld [vmem:[%s1381_s1 + $0x20] sm:$0xff]   ;;  %v1072_v49 = vld [vmem:[%s1381_s1 + $0x28] sm:$0xff]  }
   0xc   :  { %910 = vmatprep.subr.bf16.mxu0 %v1096_v0  ;;  %970 = vmatprep.subr.bf16.mxu1 %v1096_v0  ;;  %v63_v32 = vor.u32 %v62_v27, %v58_v24  ;;  %v1071_v48 = vld [vmem:[%s1381_s1 + $0x20] sm:$0xff]   ;;  %v1073_v50 = vld [vmem:[%s1381_s1 + $0x28] sm:$0xff]   ;;  %v1074_v57 = vld [vmem:[%s1381_s1 + $0x30] sm:$0xff]  }
   0xd   :  { %v418_v35 = vor.u32 %v417_v29, %v413_v28  ;;  %v249_v51 = vld [vmem:[%s1382_s0] sm:$0xe]  ;;  %v822_v54 = vld [vmem:[%s1382_s0 + $0xc] sm:$0xe]  ;;  %v1075_v59 = vld [vmem:[%s1381_s1 + $0x30] sm:$0xff]  }
   0xe   :  { %v68_v37 = vsel %vm56_vm1, %v63_v32, %v67_v33  ;;  %v776_v52 = vcombine.low %v249_v51, %v1163_v12  ;;  %v839_v55 = vcombine.low %v822_v54, %v1182_v17  ;;  %v1076_v63 = vld [vmem:[%s1381_s1 + $0x38] sm:$0xff]   ;;  %v1078_v2 = vld [vmem:[%s1381_s1 + $0x80] sm:$0xff]   ;;  %v1080_v4 = vld [vmem:[%s1381_s1 + $0x88] sm:$0xff]  }
   0xf   :  { %911 = vmatpush3.bf16.msra.mxu0 %v1048_v7  ;;  %971 = vmatpush3.bf16.msra.mxu1 %v1049_v8  ;;  %v423_v39 = vsel %vm56_vm1, %v418_v35, %v422_v36  ;;  %v1077_v1 = vld [vmem:[%s1381_s1 + $0x38] sm:$0xff]   ;;  %v1079_v3 = vld [vmem:[%s1381_s1 + $0x80] sm:$0xff]   ;;  %v1081_v5 = vld [vmem:[%s1381_s1 + $0x88] sm:$0xff]  }
  0x10   :  { %912 = vmatprep.subr.bf16.mxu0 %v1096_v0  ;;  %972 = vmatprep.subr.bf16.mxu1 %v1096_v0  ;;  %v271_v58 = vrot.slane %v776_v52, 1  ;;  %v624_v60 = vrot.slane %v839_v55, 1  ;;  %v1082_v6 = vld [vmem:[%s1381_s1 + $0x90] sm:$0xff]   ;;  %v1084_v8 = vld [vmem:[%s1381_s1 + $0x98] sm:$0xff]   ;;  %v1087_v11 = vld [vmem:[%s1381_s1 + $0xa0] sm:$0xff]  }
  0x11   :  { %v1083_v7 = vld [vmem:[%s1381_s1 + $0x90] sm:$0xff]   ;;  %v1088_v12 = vld [vmem:[%s1381_s1 + $0xa8] sm:$0xff]   ;;  %v1092_v16 = vld [vmem:[%s1381_s1 + $0xb8] sm:$0xff]  }
  0x12   :  { %v273_v61 = vsel %vm270_vm2, %v271_v58, %v272_v53  ;;  %v626_v62 = vsel %vm270_vm2, %v624_v60, %v625_v56  ;;  %v1091_v15 = vld [vmem:[%s1381_s1 + $0xb0] sm:$0xff]   ;;  %v1093_v17 = vld [vmem:[%s1381_s1 + $0xb8] sm:$0xff]  }
  0x13   :  { %913 = vmatpush3.bf16.msra.mxu0 %v1050_v9  ;;  %973 = vmatpush3.bf16.msra.mxu1 %v1051_v10  ;;  %v1085_v9 = vld [vmem:[%s1381_s1 + $0x98] sm:$0xff]   ;;  %v1086_v10 = vld [vmem:[%s1381_s1 + $0xa0] sm:$0xff]  }
  0x14   :  { %914 = vmatprep.subr.bf16.mxu0 %v1096_v0  ;;  %974 = vmatprep.subr.bf16.mxu1 %v1096_v0 }
  0x17   :  { %915 = vmatpush3.bf16.msra.mxu0 %v1052_v13  ;;  %975 = vmatpush3.bf16.msra.mxu1 %v1053_v18  ;;  %v1089_v13 = vld [vmem:[%s1381_s1 + $0xa8] sm:$0xff]  }
  0x18   :  { %916 = vmatprep.subr.bf16.mxu0 %v1096_v0  ;;  %976 = vmatprep.subr.bf16.mxu1 %v1096_v0 }
  0x1b   :  { %917 = vmatpush3.bf16.msra.mxu0 %v1054_v21  ;;  %977 = vmatpush3.bf16.msra.mxu1 %v1055_v23 }
  0x1c   :  { %918 = vmatprep.subr.bf16.mxu0 %v1096_v0  ;;  %978 = vmatprep.subr.bf16.mxu1 %v1096_v0 }
  0x1f   :  { %919 = vmatpush3.bf16.msra.mxu0 %v1056_v31  ;;  %979 = vmatpush3.bf16.msra.mxu1 %v1057_v34 }
  0x20   :  { %924 = vmatprep.subr.bf16.mxu0 %v1096_v0  ;;  %984 = vmatprep.subr.bf16.mxu1 %v1096_v0 }
  0x22   :  { %921 = vmatmul.mubr.bf16.vlgmr.msra.gmra.mrb[0].mxu0 %v68_v37  ;;  %981 = vmatmul.mubr.bf16.vlgmr.msra.gmra.mrb[0].mxu1 %v423_v39 }
  0x23   :  { %925 = vmatpush3.bf16.msra.mxu0 %v1060_v38  ;;  %985 = vmatpush3.bf16.msra.mxu1 %v1063_v40 }
  0x24   :  { %926 = vmatprep.subr.bf16.mxu0 %v1096_v0  ;;  %986 = vmatprep.subr.bf16.mxu1 %v1096_v0 }
  0x25   :  { %940 = vmatprep.mubr.msk.bf16.mxu0 %vm1097_vm0, %v1096_v0  ;;  %1000 = vmatprep.mubr.msk.bf16.mxu1 %vm1097_vm0, %v1096_v0 }
  0x27   :  { %927 = vmatpush3.bf16.msra.mxu0 %v1064_v41  ;;  %987 = vmatpush3.bf16.msra.mxu1 %v1065_v42 }
  0x28   :  { %928 = vmatprep.subr.bf16.mxu0 %v1096_v0  ;;  %988 = vmatprep.subr.bf16.mxu1 %v1096_v0 }
  0x2b   :  { %929 = vmatpush3.bf16.msra.mxu0 %v1066_v43  ;;  %989 = vmatpush3.bf16.msra.mxu1 %v1067_v44 }
  0x2c   :  { %930 = vmatprep.subr.bf16.mxu0 %v1096_v0  ;;  %990 = vmatprep.subr.bf16.mxu1 %v1096_v0 }
  0x2f   :  { %931 = vmatpush3.bf16.msra.mxu0 %v1068_v45  ;;  %991 = vmatpush3.bf16.msra.mxu1 %v1069_v46 }
  0x30   :  { %932 = vmatprep.subr.bf16.mxu0 %v1096_v0  ;;  %992 = vmatprep.subr.bf16.mxu1 %v1096_v0 }
  0x33   :  { %933 = vmatpush3.bf16.msra.mxu0 %v1070_v47  ;;  %993 = vmatpush3.bf16.msra.mxu1 %v1071_v48 }
  0x34   :  { %934 = vmatprep.subr.bf16.mxu0 %v1096_v0  ;;  %994 = vmatprep.subr.bf16.mxu1 %v1096_v0 }
  0x37   :  { %935 = vmatpush3.bf16.msra.mxu0 %v1072_v49  ;;  %995 = vmatpush3.bf16.msra.mxu1 %v1073_v50 }
  0x38   :  { %936 = vmatprep.subr.bf16.mxu0 %v1096_v0  ;;  %996 = vmatprep.subr.bf16.mxu1 %v1096_v0 }
  0x3b   :  { %937 = vmatpush3.bf16.msra.mxu0 %v1074_v57  ;;  %997 = vmatpush3.bf16.msra.mxu1 %v1075_v59 }
  0x3c   :  { %938 = vmatprep.subr.bf16.mxu0 %v1096_v0  ;;  %998 = vmatprep.subr.bf16.mxu1 %v1096_v0 }
  0x3f   :  { %939 = vmatpush3.bf16.msra.mxu0 %v1076_v63  ;;  %999 = vmatpush3.bf16.msra.mxu1 %v1077_v1 }
  0x40   :  { %944 = vmatprep.subr.bf16.mxu0 %v1096_v0  ;;  %1004 = vmatprep.subr.bf16.mxu1 %v1096_v0 }
  0x42   :  { %941 = vmatmul.mubr.bf16.vlgmr.msra.gmra.mrb[0].mxu0 %v1169_v14  ;;  %1001 = vmatmul.mubr.bf16.vlgmr.msra.gmra.mrb[0].mxu1 %v1190_v20  ;;  %v1090_v14 = vld [vmem:[%s1381_s1 + $0xb0] sm:$0xff]  }
  0x43   :  { %945 = vmatpush3.bf16.msra.mxu0 %v1078_v2  ;;  %1005 = vmatpush3.bf16.msra.mxu1 %v1079_v3 }
  0x44   :  { %946 = vmatprep.subr.bf16.mxu0 %v1096_v0  ;;  %1006 = vmatprep.subr.bf16.mxu1 %v1096_v0 }
  0x45   :  { %960 = vmatprep.mubr.msk.bf16.mxu0 %vm1097_vm0, %v1096_v0  ;;  %1020 = vmatprep.mubr.msk.bf16.mxu1 %vm1097_vm0, %v1096_v0 }
  0x47   :  { %947 = vmatpush3.bf16.msra.mxu0 %v1080_v4  ;;  %1007 = vmatpush3.bf16.msra.mxu1 %v1081_v5 }
  0x48   :  { %948 = vmatprep.subr.bf16.mxu0 %v1096_v0  ;;  %1008 = vmatprep.subr.bf16.mxu1 %v1096_v0 }
  0x4b   :  { %949 = vmatpush3.bf16.msra.mxu0 %v1082_v6  ;;  %1009 = vmatpush3.bf16.msra.mxu1 %v1083_v7 }
  0x4c   :  { %950 = vmatprep.subr.bf16.mxu0 %v1096_v0  ;;  %1010 = vmatprep.subr.bf16.mxu1 %v1096_v0 }
  0x4f   :  { %951 = vmatpush3.bf16.msra.mxu0 %v1084_v8  ;;  %1011 = vmatpush3.bf16.msra.mxu1 %v1085_v9 }
  0x50   :  { %952 = vmatprep.subr.bf16.mxu0 %v1096_v0  ;;  %1012 = vmatprep.subr.bf16.mxu1 %v1096_v0 }
  0x53   :  { %953 = vmatpush3.bf16.msra.mxu0 %v1086_v10  ;;  %1013 = vmatpush3.bf16.msra.mxu1 %v1087_v11 }
  0x54   :  { %954 = vmatprep.subr.bf16.mxu0 %v1096_v0  ;;  %1014 = vmatprep.subr.bf16.mxu1 %v1096_v0 }
  0x57   :  { %955 = vmatpush3.bf16.msra.mxu0 %v1088_v12  ;;  %1015 = vmatpush3.bf16.msra.mxu1 %v1089_v13 }
  0x58   :  { %956 = vmatprep.subr.bf16.mxu0 %v1096_v0  ;;  %1016 = vmatprep.subr.bf16.mxu1 %v1096_v0 }
  0x5b   :  { %957 = vmatpush3.bf16.msra.mxu0 %v1090_v14  ;;  %1017 = vmatpush3.bf16.msra.mxu1 %v1091_v15 }
  0x5c   :  { %958 = vmatprep.subr.bf16.mxu0 %v1096_v0  ;;  %1018 = vmatprep.subr.bf16.mxu1 %v1096_v0 }
  0x5f   :  { %959 = vmatpush3.bf16.msra.mxu0 %v1092_v16  ;;  %1019 = vmatpush3.bf16.msra.mxu1 %v1093_v17 }
  0x62   :  { %961 = vmatmul.mubr.bf16.vlgmr.msra.gmra.mrb[0].mxu0 %v273_v61  ;;  %1021 = vmatmul.mubr.bf16.vlgmr.msra.gmra.mrb[0].mxu1 %v626_v62 }
 0x135   :  { %v357_v18 = vpop.f32.mrb[0].mxu0  ;;  %v710_v19 = vpop.f32.mrb[0].mxu1 }
 0x136   :  { %366 = vst [vmem:[%s1383_s2] sm:$0xff] %v357_v18  ;;  %v962_v20 = vpop.f32.mrb[1].mxu0  ;;  %848 = vst [vmem:[%s1383_s2 + $0x10] sm:$0xff] %v710_v19  ;;  %v1022_v21 = vpop.f32.mrb[1].mxu1 }
 0x137   :  { %v360_v22 = vpop.f32.mrb[2].mxu0  ;;  %v713_v0 = vpop.f32.mrb[2].mxu1 }
 0x138   :  { %367 = vst [vmem:[%s1383_s2 + $0x8] sm:$0xff] %v360_v22  ;;  %v963_v23 = vpop.f32.mrb[3].mxu0  ;;  %849 = vst [vmem:[%s1383_s2 + $0x18] sm:$0xff] %v713_v0  ;;  %v1023_v24 = vpop.f32.mrb[3].mxu1 }

</bundles_post_ra>
